<compile_context>
chip_gen: v7x
topology: tpu7x:2x2x1
jax: 0.10.0
libtpu: 0.0.40
codegen_flags: <defaults>
</compile_context>

<pallas_src>
import functools

import jax
import jax.numpy as jnp
from jax import lax
from jax.experimental import pallas as pl
from jax.experimental.pallas import tpu as pltpu


_VMEM_LIMIT = 48 * 1024 * 1024            # leaves headroom on v7x (64 MiB physical/TC)
_NEG_INF = -0.7 * float(jnp.finfo(jnp.float32).max)
_NT_DIMS = (((1,), (1,)), ((), ()))        # x(M,K) . w(N,K)^T  (PyTorch weight layout)


# ----------------------------------------------------------------------------- helpers
def _round_up(x, m):
  return (x + m - 1) // m * m


def _pick_tile(n, max_tile=512, unit=128):
  """Largest `unit`-multiple divisor of n that is <= max_tile, else n (full dim)."""
  if n <= max_tile:
    return n
  t = (max_tile // unit) * unit
  while t >= unit:
    if n % t == 0:
      return t
    t -= unit
  # TODO(synk): pad N/K to a 128-multiple instead of falling back to a full block.
  return n


def _gelu_tanh(x):
  # F.gelu(x, approximate='tanh')
  c = 0.7978845608028654  # sqrt(2/pi)
  return 0.5 * x * (1.0 + jnp.tanh(c * (x + 0.044715 * x * x * x)))


def _gemma_rmsnorm(x, w_row, eps):
  """Gemma RMSNorm (add_unit_offset=True) on a (tm, K) tile; w_row is (1, K)."""
  x32 = x.astype(jnp.float32)
  ms = jnp.mean(x32 * x32, axis=-1, keepdims=True)
  normed = (x32 * lax.rsqrt(ms + eps)).astype(x.dtype)        # .type_as(x)
  return (normed * (1.0 + w_row)).astype(x.dtype)


def _mm_nt(a, b):
  """a: (M, K) activations, b: (N, K) weight (PyTorch layout); f32 accumulate."""
  return lax.dot_general(a, b, dimension_numbers=_NT_DIMS,
                         preferred_element_type=jnp.float32)


# -------------------------------------------------- fused RMSNorm + QKV projection
def _norm_qkv_kernel(x_ref, nw_ref, w_ref, o_ref, xn_ref, *, eps):
  # Normalize the row tile only once (j == 0); reuse for every output-column tile.
  @pl.when(pl.program_id(1) == 0)
  def _():
    xn_ref[...] = _gemma_rmsnorm(x_ref[...], nw_ref[...], eps)
  o_ref[...] = _mm_nt(xn_ref[...], w_ref[...]).astype(o_ref.dtype)


def norm_qkv_proj(x2d, norm_w, wqkv, *, eps, tm, tn):
  rows, K = x2d.shape
  ntot = wqkv.shape[0]
  return pl.pallas_call(
      functools.partial(_norm_qkv_kernel, eps=eps),
      out_shape=jax.ShapeDtypeStruct((rows, ntot), x2d.dtype),
      grid_spec=pltpu.PrefetchScalarGridSpec(
          num_scalar_prefetch=0,
          grid=(rows // tm, ntot // tn),
          in_specs=[
              pl.BlockSpec((tm, K), lambda i, j: (i, 0)),
              pl.BlockSpec((1, K), lambda i, j: (0, 0)),
              pl.BlockSpec((tn, K), lambda i, j: (j, 0)),
          ],
          out_specs=pl.BlockSpec((tm, tn), lambda i, j: (i, j)),
          scratch_shapes=[pltpu.VMEM((tm, K), x2d.dtype)],
      ),
      compiler_params=pltpu.CompilerParams(
          dimension_semantics=("parallel", "arbitrary"),
          vmem_limit_bytes=_VMEM_LIMIT),
  )(x2d, norm_w.reshape(1, K), wqkv)


# ----------------------------------------- fused RMSNorm + gate/up + gelu(gate)*up
def _norm_gateup_kernel(x_ref, nw_ref, wg_ref, wu_ref, o_ref, xn_ref, *, eps):
  @pl.when(pl.program_id(1) == 0)
  def _():
    xn_ref[...] = _gemma_rmsnorm(x_ref[...], nw_ref[...], eps)
  xn = xn_ref[...]
  gate = _mm_nt(xn, wg_ref[...])
  up = _mm_nt(xn, wu_ref[...])
  o_ref[...] = (_gelu_tanh(gate) * up).astype(o_ref.dtype)


def norm_gate_up(x2d, norm_w, wg, wu, *, eps, tm, tn):
  rows, K = x2d.shape
  inter = wg.shape[0]
  return pl.pallas_call(
      functools.partial(_norm_gateup_kernel, eps=eps),
      out_shape=jax.ShapeDtypeStruct((rows, inter), x2d.dtype),
      grid_spec=pltpu.PrefetchScalarGridSpec(
          num_scalar_prefetch=0,
          grid=(rows // tm, inter // tn),
          in_specs=[
              pl.BlockSpec((tm, K), lambda i, j: (i, 0)),
              pl.BlockSpec((1, K), lambda i, j: (0, 0)),
              pl.BlockSpec((tn, K), lambda i, j: (j, 0)),
              pl.BlockSpec((tn, K), lambda i, j: (j, 0)),
          ],
          out_specs=pl.BlockSpec((tm, tn), lambda i, j: (i, j)),
          scratch_shapes=[pltpu.VMEM((tm, K), x2d.dtype)],
      ),
      compiler_params=pltpu.CompilerParams(
          dimension_semantics=("parallel", "arbitrary"),
          vmem_limit_bytes=_VMEM_LIMIT),
  )(x2d, norm_w.reshape(1, K), wg, wu)


# --------------------------------------------------- projection + residual add (K tiled)
def _proj_residual_kernel(x_ref, w_ref, r_ref, o_ref, acc_ref):
  @pl.when(pl.program_id(2) == 0)
  def _():
    acc_ref[...] = jnp.zeros_like(acc_ref)
  acc_ref[...] += _mm_nt(x_ref[...], w_ref[...])
  @pl.when(pl.program_id(2) == pl.num_programs(2) - 1)
  def _():
    o_ref[...] = (r_ref[...].astype(jnp.float32) + acc_ref[...]).astype(o_ref.dtype)


def proj_residual(x2d, w, residual2d, *, tm, tn, tk):
  """residual + x2d @ w^T;  w is (N, K) PyTorch layout."""
  rows, K = x2d.shape
  N = w.shape[0]
  return pl.pallas_call(
      _proj_residual_kernel,
      out_shape=jax.ShapeDtypeStruct((rows, N), residual2d.dtype),
      grid_spec=pltpu.PrefetchScalarGridSpec(
          num_scalar_prefetch=0,
          grid=(rows // tm, N // tn, K // tk),
          in_specs=[
              pl.BlockSpec((tm, tk), lambda i, j, k: (i, k)),
              pl.BlockSpec((tn, tk), lambda i, j, k: (j, k)),
              pl.BlockSpec((tm, tn), lambda i, j, k: (i, j)),
          ],
          out_specs=pl.BlockSpec((tm, tn), lambda i, j, k: (i, j)),
          scratch_shapes=[pltpu.VMEM((tm, tn), jnp.float32)],
      ),
      compiler_params=pltpu.CompilerParams(
          dimension_semantics=("parallel", "parallel", "arbitrary"),
          vmem_limit_bytes=_VMEM_LIMIT),
  )(x2d, w, residual2d)


# ------------------------------------------- flash attention (RoPE + causal, online softmax)
def _flash_attn_kernel(q_ref, k_ref, v_ref, cq_ref, sq_ref, ck_ref, sk_ref,
                       o_ref, m_ref, l_ref, acc_ref, *, scale, seq_len):
  qi = pl.program_id(2)
  ki = pl.program_id(3)
  tq, d = q_ref.shape
  tk = k_ref.shape[0]
  half = d // 2

  @pl.when(ki == 0)
  def _():
    m_ref[...] = jnp.full_like(m_ref, -jnp.inf)
    l_ref[...] = jnp.zeros_like(l_ref)
    acc_ref[...] = jnp.zeros_like(acc_ref)

  # Skip KV tiles entirely in the causal future of this query tile.
  @pl.when(ki * tk < (qi + 1) * tq)
  def _():
    def rope(x_ref_, c_ref_, s_ref_):
      x32 = x_ref_[...].astype(jnp.float32)
      # cos table = [cos|cos], sin table = [-sin|sin]; roll by D/2 gives [x2|x1].
      return (x32 * c_ref_[...].astype(jnp.float32) +
              pltpu.roll(x32, shift=half, axis=1) * s_ref_[...].astype(jnp.float32))

    q = (rope(q_ref, cq_ref, sq_ref) * scale).astype(q_ref.dtype)
    k = rope(k_ref, ck_ref, sk_ref).astype(k_ref.dtype)

    s = lax.dot_general(q, k, dimension_numbers=_NT_DIMS,
                        preferred_element_type=jnp.float32)          # (tq, tk)

    q_pos = qi * tq + lax.broadcasted_iota(jnp.int32, (tq, tk), 0)
    k_pos = ki * tk + lax.broadcasted_iota(jnp.int32, (tq, tk), 1)
    valid = (k_pos <= q_pos) & (k_pos < seq_len)                     # causal + seq pad
    s = jnp.where(valid, s, _NEG_INF)

    m_prev = m_ref[...]
    m_cur = jnp.maximum(m_prev, jnp.max(s, axis=-1, keepdims=True))
    alpha = jnp.exp(m_prev - m_cur)
    p = jnp.exp(s - m_cur)
    l_ref[...] = alpha * l_ref[...] + jnp.sum(p, axis=-1, keepdims=True)
    acc_ref[...] = alpha * acc_ref[...] + jnp.dot(
        p.astype(v_ref.dtype), v_ref[...], preferred_element_type=jnp.float32)
    m_ref[...] = m_cur

  @pl.when(ki == pl.num_programs(3) - 1)
  def _():
    o_ref[...] = (acc_ref[...] *
                  pl.reciprocal(l_ref[...], approx=True)).astype(o_ref.dtype)


def flash_causal_attention(qkv, cos_full, sin_full, out_dtype, *,
                           B, S_pad, S, H, KVH, D, seq_tile):
  """qkv: (B*S_pad, (H+2*KVH)*D) fused projection output; cos/sin: (B*S_pad, D)."""
  rows = B * S_pad
  t = seq_tile
  nq = S_pad // t
  qpkv = H // KVH
  scale = float(D) ** -0.5

  q_idx = lambda b, h, qi, ki: (b * nq + qi, h)
  k_idx = lambda b, h, qi, ki: (b * nq + ki, H + h // qpkv)
  v_idx = lambda b, h, qi, ki: (b * nq + ki, H + KVH + h // qpkv)
  cq_idx = lambda b, h, qi, ki: (b * nq + qi, 0)
  ck_idx = lambda b, h, qi, ki: (b * nq + ki, 0)

  return pl.pallas_call(
      functools.partial(_flash_attn_kernel, scale=scale, seq_len=S),
      out_shape=jax.ShapeDtypeStruct((rows, H * D), out_dtype),
      grid_spec=pltpu.PrefetchScalarGridSpec(
          num_scalar_prefetch=0,
          grid=(B, H, nq, nq),
          in_specs=[
              pl.BlockSpec((t, D), q_idx),
              pl.BlockSpec((t, D), k_idx),
              pl.BlockSpec((t, D), v_idx),
              pl.BlockSpec((t, D), cq_idx),
              pl.BlockSpec((t, D), cq_idx),
              pl.BlockSpec((t, D), ck_idx),
              pl.BlockSpec((t, D), ck_idx),
          ],
          out_specs=pl.BlockSpec((t, D), q_idx),
          scratch_shapes=[
              pltpu.VMEM((t, 1), jnp.float32),     # m
              pltpu.VMEM((t, 1), jnp.float32),     # l
              pltpu.VMEM((t, D), jnp.float32),     # acc
          ],
      ),
      compiler_params=pltpu.CompilerParams(
          dimension_semantics=("parallel", "parallel", "parallel", "arbitrary"),
          vmem_limit_bytes=_VMEM_LIMIT),
  )(qkv, qkv, qkv, cos_full, sin_full, cos_full, sin_full)


# ----------------------------------------------------------------- full decoder layer
def gemma_decoder_layer(hidden_states, cos, sin, params, *,
                        num_heads, num_kv_heads, head_dim, eps=1e-6, seq_tile=256):
  """cos/sin: (B, S, head_dim//2) = real/imag of freqs_cis."""
  B, S, hidden = hidden_states.shape
  H, KVH, D = num_heads, num_kv_heads, head_dim
  assert H % KVH == 0
  assert D % 128 == 0, "head_dim must be a multiple of 128 (TPU lane width)"

  # Pad the sequence so attention row tiles never straddle batch boundaries.
  t = min(seq_tile, _round_up(S, 8))
  S_pad = _round_up(S, t)
  if S_pad != S:
    hidden_states = jnp.pad(hidden_states, ((0, 0), (0, S_pad - S), (0, 0)))
    cos = jnp.pad(cos, ((0, 0), (0, S_pad - S), (0, 0)))
    sin = jnp.pad(sin, ((0, 0), (0, S_pad - S), (0, 0)))
  rows = B * S_pad
  x2d = hidden_states.reshape(rows, hidden)

  # Lane-dense RoPE tables (width D); rotate-half sign folded into sin.
  cos_full = jnp.concatenate([cos, cos], axis=-1).reshape(rows, D)
  sin_full = jnp.concatenate([-sin, sin], axis=-1).reshape(rows, D)

  tm = t                                   # row tile; divides B*S_pad by construction
  ntot = (H + 2 * KVH) * D
  inter = params["wg"].shape[0]
  tn_qkv = _pick_tile(ntot)
  tn_hid = _pick_tile(hidden)
  tn_int = _pick_tile(inter)
  tk_attn = _pick_tile(H * D)
  tk_int = _pick_tile(inter)

  # input_layernorm fused into the (pre-fused at load time) QKV projection.
  qkv = norm_qkv_proj(x2d, params["input_norm"], params["wqkv"],
                      eps=eps, tm=tm, tn=tn_qkv)

  # RoPE + causal flash attention, reading Q/K/V straight from the QKV output.
  # TODO(synk): jetstream's KV-cache update (cache.update) and env.apply_sharding
  # have no in-script equivalent; this implements the single-device causal prefill path.
  attn = flash_causal_attention(qkv, cos_full, sin_full, x2d.dtype,
                                B=B, S_pad=S_pad, S=S, H=H, KVH=KVH, D=D, seq_tile=t)

  # o_proj fused with the first residual add.
  h1 = proj_residual(attn, params["wo"], x2d, tm=tm, tn=tn_hid, tk=tk_attn)

  # post_attention_layernorm fused with gate/up projections + gelu(tanh)*up.
  fuse = norm_gate_up(h1, params["post_norm"], params["wg"], params["wu"],
                      eps=eps, tm=tm, tn=tn_int)

  # down_proj fused with the second residual add.
  out2d = proj_residual(fuse, params["wd"], h1, tm=tm, tn=tn_hid, tk=tk_int)
  out = out2d.reshape(B, S_pad, hidden)
  return out[:, :S, :] if S_pad != S else out


# ------------------------------------------------------------------ pure-JAX reference
def decoder_layer_ref(x, cos, sin, params, *, num_heads, num_kv_heads, head_dim,
                      eps=1e-6):
  B, S, hidden = x.shape
  H, KVH, D = num_heads, num_kv_heads, head_dim

  def rmsnorm(v, w):
    v32 = v.astype(jnp.float32)
    n = (v32 * lax.rsqrt(jnp.mean(v32 * v32, axis=-1, keepdims=True) + eps)).astype(v.dtype)
    return n * (1.0 + w)

  def rope(t):  # t: (B, S, nH, D)
    half = D // 2
    x1 = t[..., :half].astype(jnp.float32)
    x2 = t[..., half:].astype(jnp.float32)
    c = cos[:, :, None, :]
    s = sin[:, :, None, :]
    return jnp.concatenate([x1 * c - x2 * s, x1 * s + x2 * c], axis=-1).astype(t.dtype)

  h = rmsnorm(x, params["input_norm"])
  xq = jnp.einsum("bsh,oh->bso", h, params["wq"]).reshape(B, S, H, D)
  xk = jnp.einsum("bsh,oh->bso", h, params["wk"]).reshape(B, S, KVH, D)
  xv = jnp.einsum("bsh,oh->bso", h, params["wv"]).reshape(B, S, KVH, D)
  xq, xk = rope(xq), rope(xk)

  qpkv = H // KVH
  xkr = jnp.repeat(xk, qpkv, axis=2)
  xvr = jnp.repeat(xv, qpkv, axis=2)
  scores = jnp.einsum("bqhd,bkhd->bhqk", xq.astype(jnp.float32),
                      xkr.astype(jnp.float32)) * (float(D) ** -0.5)
  causal = jnp.tril(jnp.ones((S, S), dtype=bool))
  scores = jnp.where(causal[None, None], scores, -1e30)
  probs = jax.nn.softmax(scores, axis=-1)
  attn = jnp.einsum("bhqk,bkhd->bqhd", probs, xvr.astype(jnp.float32))
  attn = attn.reshape(B, S, H * D).astype(x.dtype)
  attn_out = jnp.einsum("bsk,hk->bsh", attn, params["wo"])
  h1 = x + attn_out

  g = rmsnorm(h1, params["post_norm"])
  gate = _gelu_tanh(jnp.einsum("bsh,ih->bsi", g, params["wg"]))
  up = jnp.einsum("bsh,ih->bsi", g, params["wu"])
  down = jnp.einsum("bsi,hi->bsh", gate * up, params["wd"])
  return h1 + down


# ------------------------------------------------------------------------------- demo
if __name__ == "__main__":
  key = jax.random.PRNGKey(0)
  ks = jax.random.split(key, 10)

  B, S = 2, 16
  hidden = 256
  H, KVH, D = 4, 2, 128      # GQA: 4 query heads, 2 kv heads, head_dim 128
  inter = 512
  eps = 1e-6
  dtype = jnp.float32

  x = jax.random.normal(ks[0], (B, S, hidden), dtype=dtype)

  def w(k, shape, scale=0.05):
    return scale * jax.random.normal(k, shape, dtype=dtype)

  params = {
      # RMSNorm params init to zeros in the module; perturb so the path is exercised.
      "input_norm": 0.1 * jax.random.normal(ks[1], (hidden,), dtype=dtype),
      "post_norm": 0.1 * jax.random.normal(ks[2], (hidden,), dtype=dtype),
      # torch.nn.Linear weights are (out_features, in_features) — kept as-is.
      "wq": w(ks[3], (H * D, hidden)),
      "wk": w(ks[4], (KVH * D, hidden)),
      "wv": w(ks[5], (KVH * D, hidden)),
      "wo": w(ks[6], (hidden, H * D)),
      "wg": w(ks[7], (inter, hidden)),
      "wu": w(ks[8], (inter, hidden)),
      "wd": w(ks[9], (hidden, inter)),
  }
  # One-time (model-load) weight layout: fuse Q/K/V projections. No per-call
  # transpose/concat; kernels contract on the shared input dimension directly.
  params["wqkv"] = jnp.concatenate([params["wq"], params["wk"], params["wv"]], axis=0)

  # freqs_cis = cos + i*sin, shape (B, S, D/2), standard RoPE frequencies.
  inv_freq = 1.0 / (10000.0 ** (jnp.arange(0, D, 2, dtype=jnp.float32) / D))
  pos = jnp.arange(S, dtype=jnp.float32)
  angles = pos[:, None] * inv_freq[None, :]                      # (S, D/2)
  cos = jnp.broadcast_to(jnp.cos(angles)[None], (B, S, D // 2)).astype(jnp.float32)
  sin = jnp.broadcast_to(jnp.sin(angles)[None], (B, S, D // 2)).astype(jnp.float32)

  out = gemma_decoder_layer(x, cos, sin, params,
                            num_heads=H, num_kv_heads=KVH, head_dim=D, eps=eps)
  out = jax.block_until_ready(out)

  ref = decoder_layer_ref(x, cos, sin, params,
                          num_heads=H, num_kv_heads=KVH, head_dim=D, eps=eps)

  assert out.shape == ref.shape == (B, S, hidden)
  max_err = float(jnp.max(jnp.abs(out - ref)))
  assert max_err < 2e-2, f"mismatch, max_err={max_err}"
  print("KERNEL_OK")
</pallas_src>

<mosaic_0001>
module attributes {stable_mosaic.version = 11 : i64} {
  func.func @_norm_qkv_kernel(%arg0: i32, %arg1: i32, %arg2: memref<16x256xf32, #tpu.memory_space<vmem>>, %arg3: memref<1x256xf32, #tpu.memory_space<vmem>>, %arg4: memref<512x256xf32, #tpu.memory_space<vmem>>, %arg5: memref<16x512xf32, #tpu.memory_space<vmem>>, %arg6: memref<16x256xf32, #tpu.memory_space<vmem>>) attributes {dimension_semantics = [#tpu.dimension_semantics<parallel>, #tpu.dimension_semantics<arbitrary>], iteration_bounds = array<i64: 2, 2>, scalar_prefetch = 0 : i64, scratch_operands = 1 : i64, tpu.core_type = #tpu.core_type<tc>, window_params = [{transform_indices = @transform_0, window_bounds = array<i64: 16, 256>}, {pipeline_mode = #tpu.pipeline_mode<synchronous>, transform_indices = @transform_1, window_bounds = array<i64: 1, 256>}, {transform_indices = @transform_2, window_bounds = array<i64: 512, 256>}, {transform_indices = @transform_3, window_bounds = array<i64: 16, 512>}]} {
    %c0_i32 = arith.constant 0 : i32
    %0 = arith.cmpi eq, %arg1, %c0_i32 : i32
    %1 = arith.extui %0 : i1 to i32
    %c0_i32_0 = arith.constant 0 : i32
    %2 = arith.cmpi ne, %1, %c0_i32_0 : i32
    scf.if %2 {
      %c0_6 = arith.constant 0 : index
      %c0_7 = arith.constant 0 : index
      %7 = vector.load %arg2[%c0_6, %c0_7] : memref<16x256xf32, #tpu.memory_space<vmem>>, vector<16x256xf32>
      %c0_8 = arith.constant 0 : index
      %c0_9 = arith.constant 0 : index
      %8 = vector.load %arg3[%c0_8, %c0_9] : memref<1x256xf32, #tpu.memory_space<vmem>>, vector<1x256xf32>
      %9 = arith.mulf %7, %7 : vector<16x256xf32>
      %cst_10 = arith.constant dense<0.000000e+00> : vector<16xf32>
      %10 = vector.multi_reduction <add>, %9, %cst_10 [1] : vector<16x256xf32> to vector<16xf32>
      %11 = vector.shape_cast %10 : vector<16xf32> to vector<16x1xf32>
      %cst_11 = arith.constant 2.560000e+02 : f32
      %12 = vector.broadcast %cst_11 : f32 to vector<16x1xf32>
      %13 = arith.divf %11, %12 : vector<16x1xf32>
      %cst_12 = arith.constant 9.99999997E-7 : f32
      %14 = vector.broadcast %cst_12 : f32 to vector<16x1xf32>
      %15 = arith.addf %13, %14 : vector<16x1xf32>
      %16 = math.rsqrt %15 : vector<16x1xf32>
      %17 = vector.broadcast %16 : vector<16x1xf32> to vector<16x256xf32>
      %18 = arith.mulf %7, %17 : vector<16x256xf32>
      %cst_13 = arith.constant 1.000000e+00 : f32
      %19 = vector.broadcast %cst_13 : f32 to vector<1x256xf32>
      %20 = arith.addf %19, %8 : vector<1x256xf32>
      %21 = vector.broadcast %20 : vector<1x256xf32> to vector<16x256xf32>
      %22 = arith.mulf %18, %21 : vector<16x256xf32>
      %c0_14 = arith.constant 0 : index
      %c0_15 = arith.constant 0 : index
      %23 = vector.load %arg6[%c0_14, %c0_15] : memref<16x256xf32, #tpu.memory_space<vmem>>, vector<16x256xf32>
      tpu.vector_store %arg6[%c0_14, %c0_15], %22 {strides = array<i32>} : memref<16x256xf32, #tpu.memory_space<vmem>>, vector<16x256xf32>,
    } else {
    }
    %c0 = arith.constant 0 : index
    %c0_1 = arith.constant 0 : index
    %3 = vector.load %arg6[%c0, %c0_1] : memref<16x256xf32, #tpu.memory_space<vmem>>, vector<16x256xf32>
    %c0_2 = arith.constant 0 : index
    %c0_3 = arith.constant 0 : index
    %4 = vector.load %arg4[%c0_2, %c0_3] : memref<512x256xf32, #tpu.memory_space<vmem>>, vector<512x256xf32>
    %cst = arith.constant dense<0.000000e+00> : vector<16x512xf32>
    %5 = tpu.matmul %3, %4, %cst {dimension_numbers = #tpu.dot_dimension_numbers<[1], [1], [0], [0], [0, 0, 1, 0], [], []>} : vector<16x256xf32>, vector<512x256xf32>, vector<16x512xf32> -> vector<16x512xf32>
    %c0_4 = arith.constant 0 : index
    %c0_5 = arith.constant 0 : index
    %6 = vector.load %arg5[%c0_4, %c0_5] : memref<16x512xf32, #tpu.memory_space<vmem>>, vector<16x512xf32>
    tpu.vector_store %arg5[%c0_4, %c0_5], %5 {strides = array<i32>} : memref<16x512xf32, #tpu.memory_space<vmem>>, vector<16x512xf32>,
    return
  }
  func.func @transform_0(%arg0: i32, %arg1: i32) -> (i32, i32) {
    %c0_i32 = arith.constant 0 : i32
    %c0_i32_0 = arith.constant 0 : i32
    return %arg0, %c0_i32 : i32, i32
  }
  func.func @transform_1(%arg0: i32, %arg1: i32) -> (i32, i32) {
    %c0_i32 = arith.constant 0 : i32
    %c0_i32_0 = arith.constant 0 : i32
    %c0_i32_1 = arith.constant 0 : i32
    return %c0_i32, %c0_i32_0 : i32, i32
  }
  func.func @transform_2(%arg0: i32, %arg1: i32) -> (i32, i32) {
    %c0_i32 = arith.constant 0 : i32
    %c0_i32_0 = arith.constant 0 : i32
    return %arg1, %c0_i32 : i32, i32
  }
  func.func @transform_3(%arg0: i32, %arg1: i32) -> (i32, i32) {
    %c0_i32 = arith.constant 0 : i32
    return %arg0, %arg1 : i32, i32
  }
}

</mosaic_0001>

<bundles_post_ra>
// kernel: tpu_custom_call.1
= control target key start
LH: loop header
LB: loop body
LE: loop exit
PB: predicated region body
PF: predicated region fallthrough
CT: control target
= control target key end

     0   :  { %s1753_s0 = inlined_call_operand.hbm [shape: f32[32,256], index: 0, kind: input, shape index: {}]   ;;  %s1754_s1 = inlined_call_operand.vmem [shape: f32[1,256], index: 1, kind: input, shape index: {}]   ;;  %s1755_s2 = inlined_call_operand.hbm [shape: f32[1024,256], index: 2, kind: input, shape index: {}]   ;;  %s1756_s3 = inlined_call_operand.hbm [shape: f32[32,1024], index: 3, kind: output, shape index: {}]  }
   0x1   :  { %1769 = sst [smem:[#allocation16_spill]] %s1753_s0 }
   0x2   :  { %1770 = sst [smem:[#allocation17_spill]] %s1755_s2 }
   0x3   :  { %1771 = sst [smem:[#allocation18_spill]] %s1756_s3 }
   0x4   :  { %8 = vsyncpa [#allocation4], 0 }
   0x5   :  { %10 = vsyncpa [#allocation4 + $0x1], 0 }
   0x6   :  { %11 = vsyncpa [#allocation7], 0 }
   0x7   :  { %13 = vsyncpa [#allocation7 + $0x1], 0 }
   0x8   :  { %14 = vsyncpa [#allocation5], 0 }
   0x9   :  { %16 = vsyncpa [#allocation5 + $0x1], 0  ;;  %s1257_s12 = smov 0   ;;  %s1259_s13 = smov 0  }
   0xa   :  { %s1261_s14 = smov 0   ;;  %s1263_s15 = smov 0  }
   0xb   :  { %s1265_s16 = smov 0   ;;  %s1267_s17 = smov 0  }
   0xc   :  { %s1269_s18 = smov 0   ;;  %s1271_s19 = smov 0  }
   0xd   :  { %s1273_s20 = smov 0   ;;  %s1275_s21 = smov 0  }
   0xe   :  { %s1277_s22 = smov 0   ;;  %s1279_s23 = smov 0  }
   0xf   :  { %s1281_s24 = smov 0   ;;  %s1283_s25 = smov 0  }
  0x10 LB: > { %1772 = sst [smem:[#allocation12_spill]] %s1219_s23  ;;  %s720_s26 = sadd.s32 4294967295, %s1227_s25   ;;  %s1227_s25 = sphi %s1283_s25, %s22_s25   ;;  %s1223_s24 = sphi %s1281_s24, %s1802_s24   ;;  %s1219_s23 = sphi %s1279_s23, %s1801_s23   ;;  %s1215_s22 = sphi %s1277_s22, %s1800_s22   ;;  %s1211_s21 = sphi %s1275_s21, %s1799_s21   ;;  %s1207_s20 = sphi %s1273_s20, %s1811_s20   ;;  %s1203_s19 = sphi %s1271_s19, %s1810_s19   ;;  %s1199_s18 = sphi %s1269_s18, %s1809_s18   ;;  %s1195_s17 = sphi %s1267_s17, %s1808_s17   ;;  %s1191_s16 = sphi %s1265_s16, %s1807_s16   ;;  %s1187_s15 = sphi %s1263_s15, %s1806_s15   ;;  %s1183_s14 = sphi %s1261_s14, %s1805_s14   ;;  %s1179_s13 = sphi %s1259_s13, %s1804_s13   ;;  %s1175_s12 = sphi %s1257_s12, %s1803_s12  }
  0x11   : > { %1773 = sst [smem:[#allocation13_spill]] %s1223_s24  ;;  %p48_p0 = scmp.ne.s32.totalorder %s1207_s20, %s1203_s19 }
  0x12   : > { %p1758_p1 = scmp.eq.s32.totalorder %s1227_s25, 0  ;;  %p54_p2 = scmp.ne.s32.totalorder %s1203_s19, %s1199_s18 }
  0x13   : > { %p1334_p3 = scmp.eq.s32.totalorder %s720_s26, 0  ;;  %p1757_p6 = scmp.lt.s32.totalorder %s1227_s25, 4 }
  0x14   : > { %p50_p4 = por %p1758_p1, %p48_p0  ;;  %s156_s4 = sand.u32 1, %s1207_s20  }
  0x15   : > { %p1342_p5 = por %p1334_p3, %p54_p2  ;;  %s745_s5 = sshll.u32 %s1223_s24, 9 }
  0x16   : > { %s724_s6 = sshll.u32 %s156_s4, 5  ;;  %s1776_s0 = sld [smem:[#allocation16_spill]] }
  0x17   : > { %s1775_s30 = scalar_select %p1342_p5, 1, 0 }
  0x18   : > { %s160_s10 = scalar_lea.vmem [#allocation3], %s724_s6  ;;  %p1356_p7 = pnand %p1757_p6, %p50_p4 }
  0x19   : > { %s168_s11 = sshll.u32 %s160_s10, 4  ;;  %s1362_s28 = scalar_lea.sflag [#allocation4], %s156_s4  ;;  %s1360_s11 = int_to_ptr.vmem [resolvable:$true] %s168_s11 }
  0x1a   : > { %p1019_p9 = pneg %p1356_p7 }
  0x1c   : > { %s1352_s9 = scalar_lea.hbm %s1776_s0, %s745_s5  ;;  %s1022_s8 = scalar_lea.hbm %s1776_s0, 1024 }
  0x1d   : > { %s1017_s7 = scalar_lea.hbm %s1352_s9, 512  ;;  %p1023_p12 = scmp.lt.u32.totalorder %s1352_s9, %s1776_s0 }
  0x1e   : > { %p1018_p8 = scmp.ne.s32.totalorder %s1352_s9, %s1017_s7  ;;  %p1024_p13 = scmp.lt.u32.totalorder %s1022_s8, %s1017_s7 }
  0x1f   : > { %p1026_p2 = scmp.lt.u32.totalorder %s1017_s7, %s1352_s9 }
  0x20   : > { %p1020_p10 = pnand %p1019_p9, %p1018_p8  ;;  %p1025_p0 = por %p1024_p13, %p1023_p12 }
  0x22   : > { %p1021_p11 = pneg %p1020_p10  ;;  %p1027_p4 = por %p1026_p2, %p1025_p0 }
  0x24   : > { %p1028_p6 = pnand %p1027_p4, %p1021_p11 }
  0x26   : > { %1031 = shalt.err (!%p1028_p6)
}
  0x27   : > { %s1032_s4 = scalar_lea.vmem %s1360_s11, 512  ;;  %s1229_s5 = smov [#allocation3]  }
  0x28   : > { %p1033_p8 = scmp.ne.s32.totalorder %s1360_s11, %s1032_s4  ;;  %s1037_s6 = sshll.u32 %s1229_s5, 4  ;;  %s1038_s6 = int_to_ptr.vmem [resolvable:$false] %s1037_s6 }
  0x29   : > { %s1039_s27 = scalar_lea.vmem %s1038_s6, 1024  ;;  %p1040_p5 = scmp.lt.s32.totalorder %s1360_s11, %s1038_s6 }
  0x2a   : > { %p1035_p10 = pnand %p1033_p8, %p1019_p9  ;;  %p1041_p12 = scmp.lt.s32.totalorder %s1039_s27, %s1032_s4 }
  0x2c   : > { %p1036_p1 = pneg %p1035_p10  ;;  %p1042_p13 = por %p1041_p12, %p1040_p5 }
  0x2e   : > { %p1043_p0 = pnand %p1042_p13, %p1036_p1 }
  0x30   : > { %1046 = shalt.err (!%p1043_p0)
}
  0x31   : > { %s1760_s7 = smov 256   ;;  %s1761_s8 = smov 16  }
  0x32   : > { %886 = dma.hbm_to_vmem [thread:$0]  (!%p1356_p7), %s1352_s9, 512, %s1360_s11, %s1362_s28, %s1760_s7, %s1760_s7, %s1761_s8  }
  0x33   : > { %p732_p1 = scmp.ge.s32.totalorder %s1227_s25, 1  ;;  %p198_p5 = scmp.lt.s32.totalorder %s1227_s25, 5 }
  0x34   : > { %p1397_p6 = scmp.eq.s32.totalorder %s720_s26, 3  ;;  %s721_s18 = sadd.s32 4294967294, %s1227_s25  }
  0x35   : > { %p1401_p9 = pnand %p732_p1, %p198_p5  ;;  %s31_s5 = sadd.s32 1, %s1219_s23 }
  0x36   : > { %p32_p7 = scmp.ge.s32.totalorder %s31_s5, 2  ;;  %s88_s28 = sadd.s32 1, %s1195_s17 }
  0x37   : > { %p95_p11 = scmp.ne.s32.totalorder %s1195_s17, %s1191_s16  ;;  %p101_p2 = scmp.ne.s32.totalorder %s1191_s16, %s1187_s15 }
  0x38   : > { %s1813_s5 = smov (%p32_p7, %s31_s5), 0  ;;  %s1781_s26 = sadd.s32 1, %s1223_s24 }
  0x39   : > { %1780 = sst [smem:[#allocation14_spill]] %s1813_s5  ;;  %s1815_s26 = smov (!%p32_p7, %s1781_s26), %s1223_s24 }
  0x3a   : > { %s85_s9 = ssub.s32 %s1219_s23, %s1813_s5  ;;  %s116_s11 = sadd.s32 1, %s1183_s14 }
  0x3b   : > { %p36_p4 = scmp.ge.s32.totalorder %s1815_s26, 2  ;;  %p86_p8 = scmp.eq.s32.totalorder %s85_s9, 0 }
  0x3c   : > { %p1422_p10 = por %p101_p2, %p1334_p3  ;;  %p126_p12 = scmp.ne.s32.totalorder %s1183_s14, %s1179_s13 }
  0x3d   : > { %s1817_s26 = smov (%p36_p4, %s1815_s26), 0  ;;  %p132_p1 = scmp.ne.s32.totalorder %s1179_s13, %s1175_s12 }
  0x3e   : > { %s1782_s15 = scalar_select %p1422_p10, 1, 0 }
  0x3f   : > { %1783 = sst [smem:[#allocation15_spill]] %s1817_s26  ;;  %s38_s27 = ssub.s32 %s1223_s24, %s1817_s26 }
  0x40   : > { %s1431_s6 = scalar_select %p86_p8, %s1195_s17, %s88_s28  }
  0x41   : > { %p1437_p13 = por %p1397_p6, %p126_p12  ;;  %p39_p0 = scmp.eq.s32.totalorder %s38_s27, 0 }
  0x42   : > { %s113_s29 = sor.u32 %s85_s9, %s38_s27  ;;  %s1785_s8 = sadd.s32 1, %s1207_s20 }
  0x43   : > { %s1784_s7 = scalar_select %p1437_p13, 1, 0 }
  0x44   : > { %p114_p3 = scmp.eq.s32.totalorder %s113_s29, 0  ;;  %p133_p5 = scmp.eq.s32.totalorder %s721_s18, 3 }
  0x45   : > { %s1446_s0 = scalar_select %p39_p0, %s1207_s20, %s1785_s8  }
  0x46   : > { %s1449_s5 = scalar_select %p114_p3, %s1183_s14, %s116_s11  }
  0x47   : > { %s178_s3 = sand.u32 1, %s1195_s17   ;;  %p1786_p7 = scmp.eq.s32.totalorder %s1227_s25, 0 }
  0x48   : > { %s728_s10 = sshll.u32 %s178_s3, 10  ;;  %p1457_p6 = por %p133_p5, %p132_p1 }
  0x49   : > { %p97_p2 = por %p95_p11, %p1786_p7  ;;  %s747_s26 = sshll.u32 %s1219_s23, 14 }
  0x4a   : > { %s1787_s28 = scalar_select %p1457_p6, 1, 0 }
  0x4b   : > { %s182_s24 = scalar_lea.vmem [#allocation6], %s728_s10  ;;  %s1788_s2 = sld [smem:[#allocation17_spill]] }
  0x4c   : > { %s190_s9 = sshll.u32 %s182_s24, 4  ;;  %p1789_p11 = scmp.lt.s32.totalorder %s1227_s25, 4  ;;  %s1467_s9 = int_to_ptr.vmem [resolvable:$true] %s190_s9 }
  0x4d   : > { %s1475_s11 = scalar_lea.sflag [#allocation7], %s178_s3 }
  0x4e   : > { %p1471_p4 = pnand %p1789_p11, %p97_p2 }
  0x50   : > { %p1049_p12 = pneg %p1471_p4 }
  0x51   : > { %s1465_s8 = scalar_lea.hbm %s1788_s2, %s747_s26  ;;  %s1052_s27 = scalar_lea.hbm %s1788_s2, 32768 }
  0x52   : > { %s1047_s24 = scalar_lea.hbm %s1465_s8, 16384  ;;  %p1053_p1 = scmp.lt.u32.totalorder %s1465_s8, %s1788_s2 }
  0x53   : > { %p1048_p8 = scmp.ne.s32.totalorder %s1465_s8, %s1047_s24  ;;  %p1054_p5 = scmp.lt.u32.totalorder %s1052_s27, %s1047_s24 }
  0x54   : > { %p1056_p2 = scmp.lt.u32.totalorder %s1047_s24, %s1465_s8 }
  0x55   : > { %p1050_p0 = pnand %p1049_p12, %p1048_p8  ;;  %p1055_p7 = por %p1054_p5, %p1053_p1 }
  0x57   : > { %p1051_p3 = pneg %p1050_p0  ;;  %p1057_p11 = por %p1056_p2, %p1055_p7 }
  0x59   : > { %p1058_p6 = pnand %p1057_p11, %p1051_p3 }
  0x5b   : > { %1061 = shalt.err (!%p1058_p6)
}
  0x5c   : > { %s1062_s3 = scalar_lea.vmem %s1467_s9, 16384  ;;  %s1232_s26 = smov [#allocation6]  }
  0x5d   : > { %p1063_p8 = scmp.ne.s32.totalorder %s1467_s9, %s1062_s3  ;;  %s1067_s10 = sshll.u32 %s1232_s26, 4  ;;  %s1068_s10 = int_to_ptr.vmem [resolvable:$false] %s1067_s10 }
  0x5e   : > { %s1069_s23 = scalar_lea.vmem %s1068_s10, 32768  ;;  %p1070_p10 = scmp.lt.s32.totalorder %s1467_s9, %s1068_s10 }
  0x5f   : > { %p1065_p0 = pnand %p1063_p8, %p1049_p12  ;;  %p1071_p1 = scmp.lt.s32.totalorder %s1069_s23, %s1062_s3 }
  0x61   : > { %p1066_p13 = pneg %p1065_p0  ;;  %p1072_p5 = por %p1071_p1, %p1070_p10 }
  0x63   : > { %p1073_p7 = pnand %p1072_p5, %p1066_p13 }
  0x65   : > { %1076 = shalt.err (!%p1073_p7)
}
  0x66   : > { %s1791_s24 = smov 16   ;;  %s1792_s27 = smov 256  }
  0x67   : > { %889 = dma.hbm_to_vmem [thread:$0]  (!%p1471_p4), %s1465_s8, 16384, %s1467_s9, %s1475_s11, %s1792_s27, %s1792_s27, %s1791_s24  }
  0x68   : > { %202 = sbr.rel (%p1401_p9) target bundleno = 653 (0x28d), region = 32  ;;  %s204_s29 = sand.u32 (!%p1401_p9), 1, %s1203_s19  }
  0x69   : > { %s733_s26 = sshll.u32 (!%p1401_p9), %s204_s29, 5  ;;  %s205_s3 = scalar_lea.sflag (!%p1401_p9), [#allocation4], %s204_s29 }
  0x6a   : > { %s208_s10 = scalar_lea.vmem (!%p1401_p9), [#allocation3], %s733_s26  ;;  %p1793_p10 = scmp.ne.s32.totalorder (!%p1401_p9), %s1775_s30, 0 }
  0x6f   : > { %1162 = dma.done.wait (%p1793_p10), %s205_s3, 512  }
  0x70   : > { %1164 = vsyncadd (%p1793_p10), %s205_s3, 4294966784  ;;  %s213_s18 = sand.u32 1, %s1191_s16   ;;  %p1794_p13 = scmp.ne.s32.totalorder %s1782_s15, 0 }
  0x71   : > { %s734_s23 = sshll.u32 %s213_s18, 10  ;;  %s214_s2 = scalar_lea.sflag [#allocation7], %s213_s18 }
  0x72   : > { %s1514_s9 = scalar_lea.vmem [#allocation6], %s734_s23 }
  0x73   : > { %1166 = dma.done.wait (%p1794_p13), %s214_s2, 16384  }
  0x74   : > { %1168 = vsyncadd (%p1794_p13), %s214_s2, 4294950912  ;;  %s242_s4 = sand.u32 1, %s1179_s13   ;;  %p736_p9 = scmp.ne.s32.totalorder %s1211_s21, 0 }
  0x75   : > { %s735_s8 = sshll.u32 %s242_s4, 6  ;;  %v253_v0 = vld [vmem:[%s208_s10] sm:$0xff] (!%p736_p9)  ;;  %v254_v1 = vld [vmem:[%s208_s10 + $0x8] sm:$0xff] (!%p736_p9)  ;;  %v255_v2 = vld [vmem:[%s208_s10 + $0x10] sm:$0xff] (!%p736_p9)  ;;  %v281_v12 = vlaneseq (!%p736_p9) }
  0x76   : > { %s1523_s11 = scalar_lea.vmem [#allocation8], %s735_s8  ;;  %252 = sbr.rel (%p736_p9) target bundleno = 288 (0x120), region = 44  ;;  %v258_v3 = vmul.f32 (!%p736_p9), %v253_v0, %v253_v0  ;;  %v259_v4 = vmul.f32 (!%p736_p9), %v254_v1, %v254_v1  ;;  %v256_v5 = vld [vmem:[%s208_s10 + $0x18] sm:$0xff] (!%p736_p9)  ;;  %v260_v6 = vmul.f32 (!%p736_p9), %v255_v2, %v255_v2  ;;  %v257_v17 = vld [vmem:[%s1754_s1] sm:$0x3] (!%p736_p9) }
  0x77   : > { %v261_v7 = vmul.f32 (!%p736_p9), %v256_v5, %v256_v5  ;;  %v282_v16 = vshrl.u32 (!%p736_p9), %v281_v12, 7  ;;  %v279_v19 = vadd.f32 (!%p736_p9), 1.0, %v257_v17 }
  0x78   : > { %v262_v8 = vadd.f32 (!%p736_p9), %v259_v4, %v258_v3 }
  0x79   : > { %v265_v9 = vadd.f32 (!%p736_p9), %v261_v7, %v260_v6  ;;  %v283_v20 = vsub.s32 (!%p736_p9), 0, %v282_v16  ;;  %v287_v21 = vsub.s32 (!%p736_p9), 1, %v282_v16 }
  0x7a   : > { %263 = vadd.xlane.f32.xlu0 (!%p736_p9), %v262_v8 }
  0x7b   : > { %v284_v22 = vrot.slane (!%p736_p9), %v279_v19, %v283_v20  ;;  %v288_v23 = vrot.slane (!%p736_p9), %v279_v19, %v287_v21 }
  0x7e   : > { %266 = vadd.xlane.f32.xlu0 %v265_v9 }
 0x107   : > { %v264_v10 = vpop.xlane.xlu0 %263 }
 0x108   : > { %v269_v11 = vmul.f32 0.00390625, %v264_v10 }
 0x10a   : > { %v271_v13 = vadd.f32 1e-06, %v269_v11 }
 0x10b   : > { %v267_v14 = vpop.xlane.xlu0 %266 }
 0x10c   : > { %1013 = vrsqrt.f32 %v271_v13  ;;  %v270_v15 = vmul.f32 0.00390625, %v267_v14 }
 0x10e   : > { %v272_v18 = vadd.f32 1e-06, %v270_v15 }
 0x110   : > { %1015 = vrsqrt.f32 %v272_v18 }
 0x116   : > { %v1014_v24 = vpop.eup %1013 }
 0x117   : > { %v275_v25 = vmul.f32 %v1014_v24, %v253_v0  ;;  %v276_v26 = vmul.f32 %v1014_v24, %v254_v1 }
 0x119   : > { %v291_v27 = vmul.f32 %v284_v22, %v275_v25  ;;  %v292_v28 = vmul.f32 %v288_v23, %v276_v26 }
 0x11a   : > { %v1016_v29 = vpop.eup %1015 }
 0x11b   : > { %295 = vst [vmem:[#allocation2] sm:$0xff] %v291_v27  ;;  %296 = vst [vmem:[#allocation2 + $0x8] sm:$0xff] %v292_v28  ;;  %v277_v30 = vmul.f32 %v1016_v29, %v255_v2  ;;  %v278_v31 = vmul.f32 %v1016_v29, %v256_v5 }
 0x11d   : > { %v293_v32 = vmul.f32 %v284_v22, %v277_v30  ;;  %v294_v33 = vmul.f32 %v288_v23, %v278_v31 }
 0x11f   : > { %297 = vst [vmem:[#allocation2 + $0x10] sm:$0xff] %v293_v32  ;;  %298 = vst [vmem:[#allocation2 + $0x18] sm:$0xff] %v294_v33 }
 0x120 PF: > { %v304_v34 = vld [vmem:[%s1514_s9 + $0x8] sm:$0xff]  ;;  %v306_v35 = vld [vmem:[%s1514_s9 + $0x18] sm:$0xff]  ;;  %v303_v39 = vld [vmem:[%s1514_s9] sm:$0xff]  ;;  %s739_s15 = sshll.u32 %s1211_s21, 2  ;;  %s748_s24 = sshll.u32 %s1215_s22, 4 }
 0x121   : > { %v368_v36 = vld [vmem:[%s1514_s9 + $0x208] sm:$0xff]  ;;  %v749_v37 = vpack.c.bf16 %v306_v35, %v304_v34  ;;  %v370_v38 = vld [vmem:[%s1514_s9 + $0x218] sm:$0xff]  ;;  %v305_v40 = vld [vmem:[%s1514_s9 + $0x10] sm:$0xff]  ;;  %s607_s27 = sadd.s32 %s748_s24, %s739_s15  ;;  %s610_s26 = sshll.u32 %s1523_s11, 4  ;;  %s1669_s26 = int_to_ptr.vmem [resolvable:$true] %s610_s26 }
 0x122   : > { %v813_v41 = vpack.c.bf16 %v370_v38, %v368_v36  ;;  %v751_v42 = vpack.c.bf16 %v305_v40, %v303_v39  ;;  %v367_v43 = vld [vmem:[%s1514_s9 + $0x200] sm:$0xff]  ;;  %v369_v44 = vld [vmem:[%s1514_s9 + $0x210] sm:$0xff]  ;;  %v308_v45 = vld [vmem:[%s1514_s9 + $0x28] sm:$0xff]  ;;  %s741_s29 = sshll.u32 %s607_s27, 7  ;;  %s1795_s10 = sld [smem:[#allocation18_spill]] }
 0x123   : > { %750 = vmatprep.subr.bf16.mxu0 %v749_v37  ;;  %v815_v46 = vpack.c.bf16 %v369_v44, %v367_v43  ;;  %v310_v47 = vld [vmem:[%s1514_s9 + $0x38] sm:$0xff]  ;;  %v372_v48 = vld [vmem:[%s1514_s9 + $0x228] sm:$0xff]  ;;  %v307_v52 = vld [vmem:[%s1514_s9 + $0x20] sm:$0xff]  ;;  %s1677_s18 = scalar_lea.sflag [#allocation5], %s242_s4  ;;  %s1077_s23 = scalar_lea.vmem %s1669_s26, 1024 }
 0x124   : > { %v374_v49 = vld [vmem:[%s1514_s9 + $0x238] sm:$0xff]  ;;  %814 = vmatprep.subr.bf16.mxu1 %v813_v41  ;;  %752 = vmatpush1.bf16.xpose.msra.mxu0 %v751_v42  ;;  %v753_v50 = vpack.c.bf16 %v310_v47, %v308_v45  ;;  %v309_v53 = vld [vmem:[%s1514_s9 + $0x30] sm:$0xff]  ;;  %v371_v54 = vld [vmem:[%s1514_s9 + $0x220] sm:$0xff]  ;;  %p1078_p6 = scmp.ne.s32.totalorder %s1669_s26, %s1077_s23  ;;  %p1796_p4 = scmp.ne.s32.totalorder %s1784_s7, 0 }
 0x125   : > { %v817_v51 = vpack.c.bf16 %v374_v49, %v372_v48  ;;  %816 = vmatpush1.bf16.xpose.msra.mxu1 %v815_v46  ;;  %v373_v55 = vld [vmem:[%s1514_s9 + $0x230] sm:$0xff]  ;;  %v312_v56 = vld [vmem:[%s1514_s9 + $0x48] sm:$0xff]  ;;  %v314_v57 = vld [vmem:[%s1514_s9 + $0x58] sm:$0xff]  ;;  %v755_v60 = vpack.c.bf16 %v309_v53, %v307_v52 }
 0x126   : > { %754 = vmatprep.subr.bf16.mxu0 %v753_v50  ;;  %v376_v58 = vld [vmem:[%s1514_s9 + $0x248] sm:$0xff]  ;;  %v378_v59 = vld [vmem:[%s1514_s9 + $0x258] sm:$0xff]  ;;  %v819_v61 = vpack.c.bf16 %v373_v55, %v371_v54  ;;  %v757_v62 = vpack.c.bf16 %v314_v57, %v312_v56  ;;  %v311_v0 = vld [vmem:[%s1514_s9 + $0x40] sm:$0xff]  ;;  %p1079_p12 = pnand %p1078_p6, %p1796_p4 }
 0x127   : > { %818 = vmatprep.subr.bf16.mxu1 %v817_v51  ;;  %v821_v63 = vpack.c.bf16 %v378_v59, %v376_v58  ;;  %v313_v1 = vld [vmem:[%s1514_s9 + $0x50] sm:$0xff]  ;;  %v375_v2 = vld [vmem:[%s1514_s9 + $0x240] sm:$0xff]  ;;  %v316_v4 = vld [vmem:[%s1514_s9 + $0x68] sm:$0xff] }
 0x128   : > { %v377_v3 = vld [vmem:[%s1514_s9 + $0x250] sm:$0xff]  ;;  %v318_v5 = vld [vmem:[%s1514_s9 + $0x78] sm:$0xff]  ;;  %v380_v6 = vld [vmem:[%s1514_s9 + $0x268] sm:$0xff]  ;;  %v759_v8 = vpack.c.bf16 %v313_v1, %v311_v0  ;;  %s1667_s22 = scalar_lea.hbm %s1795_s10, %s741_s29  ;;  %p1080_p3 = pneg %p1079_p12 }
 0x129   : > { %v382_v7 = vld [vmem:[%s1514_s9 + $0x278] sm:$0xff]  ;;  %v823_v9 = vpack.c.bf16 %v377_v3, %v375_v2  ;;  %v761_v10 = vpack.c.bf16 %v318_v5, %v316_v4  ;;  %v315_v12 = vld [vmem:[%s1514_s9 + $0x60] sm:$0xff]  ;;  %v317_v13 = vld [vmem:[%s1514_s9 + $0x70] sm:$0xff] }
 0x12a   : > { %v825_v11 = vpack.c.bf16 %v382_v7, %v380_v6  ;;  %v379_v14 = vld [vmem:[%s1514_s9 + $0x260] sm:$0xff]  ;;  %v381_v15 = vld [vmem:[%s1514_s9 + $0x270] sm:$0xff]  ;;  %v320_v16 = vld [vmem:[%s1514_s9 + $0x88] sm:$0xff]  ;;  %v763_v20 = vpack.c.bf16 %v317_v13, %v315_v12 }
 0x12b   : > { %v322_v17 = vld [vmem:[%s1514_s9 + $0x98] sm:$0xff]  ;;  %v384_v18 = vld [vmem:[%s1514_s9 + $0x288] sm:$0xff]  ;;  %v827_v21 = vpack.c.bf16 %v381_v15, %v379_v14  ;;  %v319_v24 = vld [vmem:[%s1514_s9 + $0x80] sm:$0xff] }
 0x12c   : > { %756 = vmatpush1.bf16.xpose.msra.mxu0 %v755_v60  ;;  %v386_v19 = vld [vmem:[%s1514_s9 + $0x298] sm:$0xff]  ;;  %v765_v22 = vpack.c.bf16 %v322_v17, %v320_v16  ;;  %v321_v25 = vld [vmem:[%s1514_s9 + $0x90] sm:$0xff]  ;;  %v383_v26 = vld [vmem:[%s1514_s9 + $0x280] sm:$0xff] }
 0x12d   : > { %820 = vmatpush1.bf16.xpose.msra.mxu1 %v819_v61  ;;  %758 = vmatprep.subr.bf16.mxu0 %v757_v62  ;;  %v829_v23 = vpack.c.bf16 %v386_v19, %v384_v18  ;;  %v385_v27 = vld [vmem:[%s1514_s9 + $0x290] sm:$0xff]  ;;  %v324_v28 = vld [vmem:[%s1514_s9 + $0xa8] sm:$0xff]  ;;  %v326_v29 = vld [vmem:[%s1514_s9 + $0xb8] sm:$0xff]  ;;  %v767_v32 = vpack.c.bf16 %v321_v25, %v319_v24 }
 0x12e   : > { %822 = vmatprep.subr.bf16.mxu1 %v821_v63  ;;  %v388_v30 = vld [vmem:[%s1514_s9 + $0x2a8] sm:$0xff]  ;;  %v390_v31 = vld [vmem:[%s1514_s9 + $0x2b8] sm:$0xff]  ;;  %v831_v33 = vpack.c.bf16 %v385_v27, %v383_v26  ;;  %v769_v34 = vpack.c.bf16 %v326_v29, %v324_v28  ;;  %v323_v36 = vld [vmem:[%s1514_s9 + $0xa0] sm:$0xff] }
 0x12f   : > { %v833_v35 = vpack.c.bf16 %v390_v31, %v388_v30  ;;  %v325_v37 = vld [vmem:[%s1514_s9 + $0xb0] sm:$0xff]  ;;  %v387_v38 = vld [vmem:[%s1514_s9 + $0x2a0] sm:$0xff]  ;;  %v328_v40 = vld [vmem:[%s1514_s9 + $0xc8] sm:$0xff] }
 0x130   : > { %v389_v39 = vld [vmem:[%s1514_s9 + $0x2b0] sm:$0xff]  ;;  %v330_v41 = vld [vmem:[%s1514_s9 + $0xd8] sm:$0xff]  ;;  %v392_v42 = vld [vmem:[%s1514_s9 + $0x2c8] sm:$0xff]  ;;  %v771_v44 = vpack.c.bf16 %v325_v37, %v323_v36 }
 0x131   : > { %v394_v43 = vld [vmem:[%s1514_s9 + $0x2d8] sm:$0xff]  ;;  %v835_v45 = vpack.c.bf16 %v389_v39, %v387_v38  ;;  %v773_v46 = vpack.c.bf16 %v330_v41, %v328_v40  ;;  %v300_v48 = vld [vmem:[#allocation2 + $0x8] sm:$0xff]  ;;  %v327_v49 = vld [vmem:[%s1514_s9 + $0xc0] sm:$0xff] }
 0x132   : > { %v837_v47 = vpack.c.bf16 %v394_v43, %v392_v42  ;;  %495 = vmatprep.mubr.f32.mxu0 %v300_v48  ;;  %572 = vmatprep.mubr.f32.mxu1 %v300_v48  ;;  %v329_v50 = vld [vmem:[%s1514_s9 + $0xd0] sm:$0xff]  ;;  %v391_v51 = vld [vmem:[%s1514_s9 + $0x2c0] sm:$0xff]  ;;  %v332_v53 = vld [vmem:[%s1514_s9 + $0xe8] sm:$0xff] }
 0x133   : > { %v393_v52 = vld [vmem:[%s1514_s9 + $0x2d0] sm:$0xff]  ;;  %v334_v54 = vld [vmem:[%s1514_s9 + $0xf8] sm:$0xff]  ;;  %v396_v55 = vld [vmem:[%s1514_s9 + $0x2e8] sm:$0xff]  ;;  %v775_v57 = vpack.c.bf16 %v329_v50, %v327_v49 }
 0x134   : > { %760 = vmatpush1.bf16.xpose.msra.mxu0 %v759_v8  ;;  %v398_v56 = vld [vmem:[%s1514_s9 + $0x2f8] sm:$0xff]  ;;  %v839_v58 = vpack.c.bf16 %v393_v52, %v391_v51  ;;  %v777_v59 = vpack.c.bf16 %v334_v54, %v332_v53  ;;  %v331_v61 = vld [vmem:[%s1514_s9 + $0xe0] sm:$0xff]  ;;  %v333_v62 = vld [vmem:[%s1514_s9 + $0xf0] sm:$0xff] }
 0x135   : > { %824 = vmatpush1.bf16.xpose.msra.mxu1 %v823_v9  ;;  %762 = vmatprep.subr.bf16.mxu0 %v761_v10  ;;  %v841_v60 = vpack.c.bf16 %v398_v56, %v396_v55  ;;  %v395_v63 = vld [vmem:[%s1514_s9 + $0x2e0] sm:$0xff]  ;;  %v397_v0 = vld [vmem:[%s1514_s9 + $0x2f0] sm:$0xff]  ;;  %v336_v1 = vld [vmem:[%s1514_s9 + $0x108] sm:$0xff]  ;;  %v779_v5 = vpack.c.bf16 %v333_v62, %v331_v61 }
 0x136   : > { %826 = vmatprep.subr.bf16.mxu1 %v825_v11  ;;  %v338_v2 = vld [vmem:[%s1514_s9 + $0x118] sm:$0xff]  ;;  %v400_v3 = vld [vmem:[%s1514_s9 + $0x308] sm:$0xff]  ;;  %v843_v6 = vpack.c.bf16 %v397_v0, %v395_v63  ;;  %v335_v9 = vld [vmem:[%s1514_s9 + $0x100] sm:$0xff] }
 0x137   : > { %v402_v4 = vld [vmem:[%s1514_s9 + $0x318] sm:$0xff]  ;;  %v781_v7 = vpack.c.bf16 %v338_v2, %v336_v1  ;;  %v337_v10 = vld [vmem:[%s1514_s9 + $0x110] sm:$0xff]  ;;  %v399_v11 = vld [vmem:[%s1514_s9 + $0x300] sm:$0xff] }
 0x138   : > { %v845_v8 = vpack.c.bf16 %v402_v4, %v400_v3  ;;  %v401_v12 = vld [vmem:[%s1514_s9 + $0x310] sm:$0xff]  ;;  %v340_v13 = vld [vmem:[%s1514_s9 + $0x128] sm:$0xff]  ;;  %v342_v14 = vld [vmem:[%s1514_s9 + $0x138] sm:$0xff]  ;;  %v783_v17 = vpack.c.bf16 %v337_v10, %v335_v9 }
 0x139   : > { %v404_v15 = vld [vmem:[%s1514_s9 + $0x328] sm:$0xff]  ;;  %v406_v16 = vld [vmem:[%s1514_s9 + $0x338] sm:$0xff]  ;;  %v847_v18 = vpack.c.bf16 %v401_v12, %v399_v11  ;;  %v785_v19 = vpack.c.bf16 %v342_v14, %v340_v13  ;;  %v405_v24 = vld [vmem:[%s1514_s9 + $0x330] sm:$0xff] }
 0x13a   : > { %v344_v25 = vld [vmem:[%s1514_s9 + $0x148] sm:$0xff]  ;;  %v346_v26 = vld [vmem:[%s1514_s9 + $0x158] sm:$0xff]  ;;  %v409_v36 = vld [vmem:[%s1514_s9 + $0x350] sm:$0xff] }
 0x13b   : > { %v408_v27 = vld [vmem:[%s1514_s9 + $0x348] sm:$0xff]  ;;  %v410_v28 = vld [vmem:[%s1514_s9 + $0x358] sm:$0xff]  ;;  %v789_v31 = vpack.c.bf16 %v346_v26, %v344_v25  ;;  %v413_v48 = vld [vmem:[%s1514_s9 + $0x370] sm:$0xff] }
 0x13c   : > { %764 = vmatpush1.bf16.xpose.msra.mxu0 %v763_v20  ;;  %v849_v20 = vpack.c.bf16 %v406_v16, %v404_v15  ;;  %v348_v37 = vld [vmem:[%s1514_s9 + $0x168] sm:$0xff]  ;;  %v350_v38 = vld [vmem:[%s1514_s9 + $0x178] sm:$0xff] }
 0x13d   : > { %828 = vmatpush1.bf16.xpose.msra.mxu1 %v827_v21  ;;  %766 = vmatprep.subr.bf16.mxu0 %v765_v22  ;;  %v339_v21 = vld [vmem:[%s1514_s9 + $0x120] sm:$0xff]  ;;  %v341_v22 = vld [vmem:[%s1514_s9 + $0x130] sm:$0xff]  ;;  %v412_v39 = vld [vmem:[%s1514_s9 + $0x368] sm:$0xff]  ;;  %v793_v43 = vpack.c.bf16 %v350_v38, %v348_v37 }
 0x13e   : > { %830 = vmatprep.subr.bf16.mxu1 %v829_v23  ;;  %v403_v23 = vld [vmem:[%s1514_s9 + $0x320] sm:$0xff]  ;;  %v787_v29 = vpack.c.bf16 %v341_v22, %v339_v21  ;;  %v414_v40 = vld [vmem:[%s1514_s9 + $0x378] sm:$0xff]  ;;  %v352_v49 = vld [vmem:[%s1514_s9 + $0x188] sm:$0xff] }
 0x13f   : > { %v851_v30 = vpack.c.bf16 %v405_v24, %v403_v23  ;;  %v354_v50 = vld [vmem:[%s1514_s9 + $0x198] sm:$0xff]  ;;  %v416_v51 = vld [vmem:[%s1514_s9 + $0x388] sm:$0xff]  ;;  %v301_v37 = vld [vmem:[#allocation2 + $0x10] sm:$0xff] }
 0x140   : > { %v418_v52 = vld [vmem:[%s1514_s9 + $0x398] sm:$0xff]  ;;  %v797_v55 = vpack.c.bf16 %v354_v50, %v352_v49  ;;  %v356_v61 = vld [vmem:[%s1514_s9 + $0x1a8] sm:$0xff] }
 0x141   : > { %v861_v56 = vpack.c.bf16 %v418_v52, %v416_v51  ;;  %v358_v62 = vld [vmem:[%s1514_s9 + $0x1b8] sm:$0xff]  ;;  %v420_v63 = vld [vmem:[%s1514_s9 + $0x3a8] sm:$0xff] }
 0x142   : > { %v422_v0 = vld [vmem:[%s1514_s9 + $0x3b8] sm:$0xff]  ;;  %v801_v3 = vpack.c.bf16 %v358_v62, %v356_v61  ;;  %v360_v9 = vld [vmem:[%s1514_s9 + $0x1c8] sm:$0xff] }
 0x143   : > { %v865_v4 = vpack.c.bf16 %v422_v0, %v420_v63  ;;  %v362_v10 = vld [vmem:[%s1514_s9 + $0x1d8] sm:$0xff]  ;;  %v424_v11 = vld [vmem:[%s1514_s9 + $0x3c8] sm:$0xff] }
 0x144   : > { %768 = vmatpush1.bf16.xpose.msra.mxu0 %v767_v32  ;;  %v853_v32 = vpack.c.bf16 %v410_v28, %v408_v27  ;;  %v426_v12 = vld [vmem:[%s1514_s9 + $0x3d8] sm:$0xff]  ;;  %v805_v15 = vpack.c.bf16 %v362_v10, %v360_v9  ;;  %v364_v21 = vld [vmem:[%s1514_s9 + $0x1e8] sm:$0xff] }
 0x145   : > { %832 = vmatpush1.bf16.xpose.msra.mxu1 %v831_v33  ;;  %770 = vmatprep.subr.bf16.mxu0 %v769_v34  ;;  %v343_v33 = vld [vmem:[%s1514_s9 + $0x140] sm:$0xff]  ;;  %v345_v34 = vld [vmem:[%s1514_s9 + $0x150] sm:$0xff]  ;;  %v869_v16 = vpack.c.bf16 %v426_v12, %v424_v11  ;;  %v366_v22 = vld [vmem:[%s1514_s9 + $0x1f8] sm:$0xff] }
 0x146   : > { %834 = vmatprep.subr.bf16.mxu1 %v833_v35  ;;  %v407_v35 = vld [vmem:[%s1514_s9 + $0x340] sm:$0xff]  ;;  %v791_v41 = vpack.c.bf16 %v345_v34, %v343_v33  ;;  %v428_v23 = vld [vmem:[%s1514_s9 + $0x3e8] sm:$0xff]  ;;  %v430_v24 = vld [vmem:[%s1514_s9 + $0x3f8] sm:$0xff]  ;;  %v809_v27 = vpack.c.bf16 %v366_v22, %v364_v21 }
 0x147   : > { %v855_v42 = vpack.c.bf16 %v409_v36, %v407_v35  ;;  %v873_v28 = vpack.c.bf16 %v430_v24, %v428_v23  ;;  %v299_v35 = vld [vmem:[#allocation2] sm:$0xff]  ;;  %v302_v36 = vld [vmem:[#allocation2 + $0x18] sm:$0xff] }
 0x14c   : > { %772 = vmatpush1.bf16.xpose.msra.mxu0 %v771_v44  ;;  %v857_v44 = vpack.c.bf16 %v414_v40, %v412_v39 }
 0x14d   : > { %836 = vmatpush1.bf16.xpose.msra.mxu1 %v835_v45  ;;  %774 = vmatprep.subr.bf16.mxu0 %v773_v46  ;;  %v347_v45 = vld [vmem:[%s1514_s9 + $0x160] sm:$0xff]  ;;  %v349_v46 = vld [vmem:[%s1514_s9 + $0x170] sm:$0xff] }
 0x14e   : > { %838 = vmatprep.subr.bf16.mxu1 %v837_v47  ;;  %v411_v47 = vld [vmem:[%s1514_s9 + $0x360] sm:$0xff]  ;;  %v795_v53 = vpack.c.bf16 %v349_v46, %v347_v45 }
 0x14f   : > { %v859_v54 = vpack.c.bf16 %v413_v48, %v411_v47 }
 0x154   : > { %776 = vmatpush1.bf16.xpose.msra.mxu0 %v775_v57  ;;  %v351_v57 = vld [vmem:[%s1514_s9 + $0x180] sm:$0xff] }
 0x155   : > { %840 = vmatpush1.bf16.xpose.msra.mxu1 %v839_v58  ;;  %778 = vmatprep.subr.bf16.mxu0 %v777_v59  ;;  %v353_v58 = vld [vmem:[%s1514_s9 + $0x190] sm:$0xff]  ;;  %v415_v59 = vld [vmem:[%s1514_s9 + $0x380] sm:$0xff] }
 0x156   : > { %842 = vmatprep.subr.bf16.mxu1 %v841_v60  ;;  %v417_v60 = vld [vmem:[%s1514_s9 + $0x390] sm:$0xff]  ;;  %v799_v1 = vpack.c.bf16 %v353_v58, %v351_v57 }
 0x157   : > { %v863_v2 = vpack.c.bf16 %v417_v60, %v415_v59 }
 0x15c   : > { %780 = vmatpush1.bf16.xpose.msra.mxu0 %v779_v5  ;;  %v355_v5 = vld [vmem:[%s1514_s9 + $0x1a0] sm:$0xff] }
 0x15d   : > { %844 = vmatpush1.bf16.xpose.msra.mxu1 %v843_v6  ;;  %782 = vmatprep.subr.bf16.mxu0 %v781_v7  ;;  %v357_v6 = vld [vmem:[%s1514_s9 + $0x1b0] sm:$0xff]  ;;  %v419_v7 = vld [vmem:[%s1514_s9 + $0x3a0] sm:$0xff] }
 0x15e   : > { %846 = vmatprep.subr.bf16.mxu1 %v845_v8  ;;  %v421_v8 = vld [vmem:[%s1514_s9 + $0x3b0] sm:$0xff]  ;;  %v803_v13 = vpack.c.bf16 %v357_v6, %v355_v5 }
 0x15f   : > { %v867_v14 = vpack.c.bf16 %v421_v8, %v419_v7 }
 0x164   : > { %784 = vmatpush1.bf16.xpose.msra.mxu0 %v783_v17  ;;  %v359_v17 = vld [vmem:[%s1514_s9 + $0x1c0] sm:$0xff] }
 0x165   : > { %848 = vmatpush1.bf16.xpose.msra.mxu1 %v847_v18  ;;  %786 = vmatprep.subr.bf16.mxu0 %v785_v19  ;;  %v361_v18 = vld [vmem:[%s1514_s9 + $0x1d0] sm:$0xff]  ;;  %v423_v19 = vld [vmem:[%s1514_s9 + $0x3c0] sm:$0xff] }
 0x166   : > { %850 = vmatprep.subr.bf16.mxu1 %v849_v20  ;;  %v425_v20 = vld [vmem:[%s1514_s9 + $0x3d0] sm:$0xff]  ;;  %v807_v25 = vpack.c.bf16 %v361_v18, %v359_v17 }
 0x167   : > { %v871_v26 = vpack.c.bf16 %v425_v20, %v423_v19 }
 0x16c   : > { %788 = vmatpush1.bf16.xpose.msra.mxu0 %v787_v29  ;;  %v363_v29 = vld [vmem:[%s1514_s9 + $0x1e0] sm:$0xff] }
 0x16d   : > { %852 = vmatpush1.bf16.xpose.msra.mxu1 %v851_v30  ;;  %790 = vmatprep.subr.bf16.mxu0 %v789_v31  ;;  %v365_v30 = vld [vmem:[%s1514_s9 + $0x1f0] sm:$0xff]  ;;  %v427_v31 = vld [vmem:[%s1514_s9 + $0x3e0] sm:$0xff] }
 0x16e   : > { %854 = vmatprep.subr.bf16.mxu1 %v853_v32  ;;  %v429_v32 = vld [vmem:[%s1514_s9 + $0x3f0] sm:$0xff]  ;;  %v811_v33 = vpack.c.bf16 %v365_v30, %v363_v29  ;;  %s1233_s9 = smov [#allocation8]  }
 0x16f   : > { %v875_v34 = vpack.c.bf16 %v429_v32, %v427_v31  ;;  %s1081_s8 = sshll.u32 %s1233_s9, 4  ;;  %s1082_s8 = int_to_ptr.vmem [resolvable:$false] %s1081_s8 }
 0x170   : > { %s1083_s2 = scalar_lea.vmem %s1082_s8, 2048  ;;  %p1084_p2 = scmp.lt.s32.totalorder %s1669_s26, %s1082_s8 }
 0x171   : > { %p1085_p11 = scmp.lt.s32.totalorder %s1083_s2, %s1077_s23 }
 0x173   : > { %p1086_p8 = por %p1085_p11, %p1084_p2 }
 0x174   : > { %792 = vmatpush1.bf16.xpose.msra.mxu0 %v791_v41 }
 0x175   : > { %856 = vmatpush1.bf16.xpose.msra.mxu1 %v855_v42  ;;  %794 = vmatprep.subr.bf16.mxu0 %v793_v43  ;;  %p1087_p0 = pnand %p1086_p8, %p1080_p3 }
 0x176   : > { %858 = vmatprep.subr.bf16.mxu1 %v857_v44 }
 0x17c   : > { %796 = vmatpush1.bf16.xpose.msra.mxu0 %v795_v53 }
 0x17d   : > { %860 = vmatpush1.bf16.xpose.msra.mxu1 %v859_v54  ;;  %798 = vmatprep.subr.bf16.mxu0 %v797_v55 }
 0x17e   : > { %862 = vmatprep.subr.bf16.mxu1 %v861_v56 }
 0x184   : > { %800 = vmatpush1.bf16.xpose.msra.mxu0 %v799_v1 }
 0x185   : > { %864 = vmatpush1.bf16.xpose.msra.mxu1 %v863_v2  ;;  %802 = vmatprep.subr.bf16.mxu0 %v801_v3 }
 0x186   : > { %866 = vmatprep.subr.bf16.mxu1 %v865_v4 }
 0x18c   : > { %804 = vmatpush1.bf16.xpose.msra.mxu0 %v803_v13 }
 0x18d   : > { %868 = vmatpush1.bf16.xpose.msra.mxu1 %v867_v14  ;;  %806 = vmatprep.subr.bf16.mxu0 %v805_v15 }
 0x18e   : > { %870 = vmatprep.subr.bf16.mxu1 %v869_v16 }
 0x194   : > { %808 = vmatpush1.bf16.xpose.msra.mxu0 %v807_v25 }
 0x195   : > { %872 = vmatpush1.bf16.xpose.msra.mxu1 %v871_v26  ;;  %810 = vmatprep.subr.bf16.mxu0 %v809_v27 }
 0x196   : > { %874 = vmatprep.subr.bf16.mxu1 %v873_v28 }
 0x19c   : > { %812 = vmatpush1.bf16.xpose.msra.mxu0 %v811_v33 }
 0x19d   : > { %876 = vmatpush1.bf16.xpose.msra.mxu1 %v875_v34 }
 0x1a3   : > { %496 = vmatmul.mubr.f32.vlgmr.msra.gmra.mrb[0].mxu0 %v299_v35 }
 0x1a4   : > { %573 = vmatmul.mubr.f32.vlgmr.msra.gmra.mrb[0].mxu1 %v299_v35  ;;  %501 = vmatprep.mubr.f32.mxu0 %v302_v36 }
 0x1a5   : > { %578 = vmatprep.mubr.f32.mxu1 %v302_v36 }
 0x1a7   : > { %502 = vmatmul.mubr.f32.gmra.mrb[2].mxu0 %v301_v37 }
 0x1a8   : > { %579 = vmatmul.mubr.f32.gmra.mrb[2].mxu1 %v301_v37 }
 0x276   : > { %v497_v38 = vpop.f32.mrb[0].mxu0 }
 0x277   : > { %585 = vst [vmem:[%s1523_s11] sm:$0xff] %v497_v38  ;;  %v574_v39 = vpop.f32.mrb[0].mxu1  ;;  %v499_v40 = vpop.f32.mrb[1].mxu0 }
 0x278   : > { %587 = vst [vmem:[%s1523_s11 + $0x10] sm:$0xff] %v574_v39  ;;  %586 = vst [vmem:[%s1523_s11 + $0x8] sm:$0xff] %v499_v40  ;;  %v576_v41 = vpop.f32.mrb[1].mxu1 }
 0x279   : > { %588 = vst [vmem:[%s1523_s11 + $0x18] sm:$0xff] %v576_v41 }
 0x27a   : > { %v503_v42 = vpop.f32.mrb[2].mxu0 }
 0x27b   : > { %589 = vst [vmem:[%s1523_s11 + $0x20] sm:$0xff] %v503_v42  ;;  %v580_v43 = vpop.f32.mrb[2].mxu1  ;;  %v505_v44 = vpop.f32.mrb[3].mxu0 }
 0x27c   : > { %591 = vst [vmem:[%s1523_s11 + $0x30] sm:$0xff] %v580_v43  ;;  %590 = vst [vmem:[%s1523_s11 + $0x28] sm:$0xff] %v505_v44  ;;  %v582_v45 = vpop.f32.mrb[3].mxu1 }
 0x27d   : > { %592 = vst [vmem:[%s1523_s11 + $0x38] sm:$0xff] %v582_v45 }
 0x27e   : > { %1090 = shalt.err (!%p1087_p0)
}
 0x27f   : > { %s1091_s4 = scalar_lea.hbm %s1667_s22, 1024  ;;  %s1095_s15 = scalar_lea.hbm %s1795_s10, 4096 }
 0x280   : > { %p1092_p1 = scmp.ne.s32.totalorder %s1667_s22, %s1091_s4  ;;  %p1096_p10 = scmp.lt.u32.totalorder %s1667_s22, %s1795_s10 }
 0x281   : > { %p1097_p13 = scmp.lt.u32.totalorder %s1095_s15, %s1091_s4  ;;  %p1099_p6 = scmp.lt.u32.totalorder %s1091_s4, %s1667_s22 }
 0x282   : > { %p1093_p5 = pnand %p1092_p1, %p1796_p4 }
 0x283   : > { %p1098_p9 = por %p1097_p13, %p1096_p10 }
 0x284   : > { %p1094_p7 = pneg %p1093_p5 }
 0x285   : > { %p1100_p12 = por %p1099_p6, %p1098_p9 }
 0x287   : > { %p1101_p3 = pnand %p1100_p12, %p1094_p7 }
 0x289   : > { %1104 = shalt.err (!%p1101_p3)
}
 0x28a   : > { %s1234_s29 = smov 512   ;;  %s1235_s3 = smov 1024  }
 0x28b   : > { %s1236_s21 = smov 32  }
 0x28c   : > { %881 = dma.vmem_to_hbm [thread:$0]  (%p1796_p4), %s1669_s26, 1024, %s1667_s22, %s1677_s18, %s1234_s29, %s1235_s3, %s1236_s21  }
 0x28d PF: > { %p895_p2 = scmp.ge.s32.totalorder %s1227_s25, 2  ;;  %s625_s23 = sand.u32 1, %s1175_s12  }
 0x28e   : > { %p1797_p11 = scmp.ne.s32.totalorder %s1787_s28, 0  ;;  %s626_s9 = scalar_lea.sflag [#allocation5], %s625_s23 }
 0x290   : > { %p891_p8 = pnand %p895_p2, %p1797_p11 }
 0x292   : > { %1170 = dma.done.wait (!%p891_p8), %s626_s9, 1024  }
 0x293   : > { %1172 = vsyncadd (!%p891_p8), %s626_s9, 4294966272  ;;  %s22_s25 = sadd.s32 1, %s1227_s25   ;;  %s1799_s21 = sld [smem:[#allocation12_spill]] }
 0x294   : > { %p1706_p0 = scmp.ge.s32.totalorder %s22_s25, 6   ;;  %s1800_s22 = sld [smem:[#allocation13_spill]] }
 0x295   : > { %s1801_s23 = sld [smem:[#allocation14_spill]]  ;;  %s1802_s24 = sld [smem:[#allocation15_spill]] }
 0x296   : > { %s1803_s12 = smov %s1179_s13  ;;  %s1804_s13 = smov %s1183_s14 }
 0x297   : > { %s1805_s14 = smov %s1449_s5  ;;  %s1806_s15 = smov %s1191_s16 }
 0x298   : > { %s1807_s16 = smov %s1195_s17  ;;  %s1808_s17 = smov %s1431_s6 }
 0x299   : > { %s1809_s18 = smov %s1203_s19  ;;  %s1810_s19 = smov %s1207_s20 }
 0x29a   : > { %s1811_s20 = smov %s1446_s0  ;;  %21 = sbr.rel (!%p1706_p0) target bundleno = 16 (0x10), region = 94 }
 0x2a1   :  { %631 = vsyncpa [#allocation4], 1 }
 0x2a2   :  { %633 = vsyncpa [#allocation4 + $0x1], 1 }
 0x2a3   :  { %634 = vsyncpa [#allocation7], 1 }
 0x2a4   :  { %636 = vsyncpa [#allocation7 + $0x1], 1 }
 0x2a5   :  { %637 = vsyncpa [#allocation5], 1 }
 0x2a6   :  { %639 = vsyncpa [#allocation5 + $0x1], 1 }

</bundles_post_ra>
